<compile_context>
chip_gen: v7x
topology: tpu7x:2x2x1
jax: 0.10.0
libtpu: 0.0.40
codegen_flags: <defaults>
</compile_context>

<pallas_src>
import functools

import jax
import jax.numpy as jnp
import numpy as np
from jax import lax
from jax.experimental import pallas as pl
from jax.experimental.pallas import tpu as pltpu


_VMEM_LIMIT = 64 * 1024 * 1024       # scoped-VMEM ceiling; <= physical on v5e/v6e/v7x
_STREAM_BUDGET = 8 * 1024 * 1024     # VMEM budget for the streamed, double-buffered operands


def _pick_tile(n, row_bytes, budget_bytes, cap):
    """Largest multiple-of-8 row tile whose streamed working set fits the budget."""
    t = max(8, min(cap, budget_bytes // max(int(row_bytes), 1)))
    t = (t // 8) * 8
    return n if n <= t else t      # block == full dim is always layout-legal


# ---------------------------------------------------------------------------
# Kernel 1: streamed K/V projections + block-diagonal per-head context
# ---------------------------------------------------------------------------
def _ctx_accumulate(k_ref, v_ref, wk_ref, bk_ref, wv_ref, bv_ref, acc_ref,
                    *, nk, tile_nk, kt_per_split, compute_dtype):
    """Add this Nk tile's contribution  Kp^T @ Vp  to the f32 accumulator."""
    cd = compute_dtype
    kk = pl.program_id(1)

    @pl.when(kk == 0)
    def _init():
        acc_ref[...] = jnp.zeros_like(acc_ref)

    # Fused (all heads at once) projections: MXU operands in `cd`, f32
    # accumulation, biases added in f32 (v5e VPU has no bf16 path).
    Kp = jnp.dot(k_ref[...].astype(cd), wk_ref[...],
                 preferred_element_type=jnp.float32) + bk_ref[...]      # (tile_nk, d_qk)
    Vp = jnp.dot(v_ref[...].astype(cd), wv_ref[...],
                 preferred_element_type=jnp.float32) + bv_ref[...]      # (tile_nk, d_v)

    # Row mask: zero rows past Nk (partial last tile, or a fully out-of-range
    # tile when the reduction is split across cores).  Both sides are masked so
    # garbage padding rows cannot leak through 0 * NaN.
    tile_idx = pl.program_id(0) * kt_per_split + kk
    rows = tile_idx * tile_nk + lax.broadcasted_iota(jnp.int32, (tile_nk, 1), 0)
    valid = rows < nk
    Kp = jnp.where(valid, Kp, 0.0)
    Vp = jnp.where(valid, Vp, 0.0)

    # One full-width MXU contraction over the tile (no per-head 8x16 matmuls,
    # no explicit transpose):  acc += Kp^T @ Vp  of shape (d_qk, d_v).
    acc_ref[...] += lax.dot_general(
        Kp.astype(cd), Vp.astype(cd),
        dimension_numbers=(((0,), (0,)), ((), ())),
        preferred_element_type=jnp.float32)


def _ctx_fold_kernel(k_ref, v_ref, wk_ref, bk_ref, wv_ref, bv_ref,
                     wq_ref, bq_ref, mask_ref, weff_ref, beff_ref, acc_ref,
                     *, nk, tile_nk, kt_per_split, compute_dtype):
    """Accumulate ctx over Nk; on the last step fold it into the Q projection."""
    _ctx_accumulate(k_ref, v_ref, wk_ref, bk_ref, wv_ref, bv_ref, acc_ref,
                    nk=nk, tile_nk=tile_nk, kt_per_split=kt_per_split,
                    compute_dtype=compute_dtype)

    @pl.when(pl.program_id(1) == pl.num_programs(1) - 1)
    def _finalize():
        # Block-diagonal head mask applied once (not per Nk tile), then fold:
        #   out = (Q @ Wq + bq) @ ctx = Q @ (Wq @ ctx) + (bq @ ctx)
        ctx = (acc_ref[...] * mask_ref[...]).astype(compute_dtype)      # (d_qk, d_v)
        weff_ref[...] = jnp.dot(wq_ref[...], ctx,
                                preferred_element_type=jnp.float32
                                ).astype(weff_ref.dtype)                # (in_query, d_v)
        # bq @ ctx as an (8, d_qk) @ (d_qk, d_v) matmul (sublane-broadcast the
        # bias row) to keep MXU operand shapes well-formed; keep row 0.
        bq8 = jnp.broadcast_to(bq_ref[...].astype(compute_dtype), (8, ctx.shape[0]))
        beff_ref[...] = jnp.dot(bq8, ctx,
                                preferred_element_type=jnp.float32)[:1]  # (1, d_v)


def _ctx_kernel(k_ref, v_ref, wk_ref, bk_ref, wv_ref, bv_ref, mask_ref,
                ctx_ref, acc_ref, *, nk, tile_nk, kt_per_split, compute_dtype):
    """Accumulate ctx over Nk; on the last step store the masked block-diag ctx."""
    _ctx_accumulate(k_ref, v_ref, wk_ref, bk_ref, wv_ref, bv_ref, acc_ref,
                    nk=nk, tile_nk=tile_nk, kt_per_split=kt_per_split,
                    compute_dtype=compute_dtype)

    @pl.when(pl.program_id(1) == pl.num_programs(1) - 1)
    def _finalize():
        ctx_ref[...] = (acc_ref[...] * mask_ref[...]).astype(ctx_ref.dtype)


# ---------------------------------------------------------------------------
# Kernel 2: per-Nq-tile application (lane-dense output in concatenated layout)
# ---------------------------------------------------------------------------
def _apply_folded_kernel(q_ref, weff_ref, beff_ref, o_ref, *, compute_dtype):
    o = jnp.dot(q_ref[...].astype(compute_dtype), weff_ref[...],
                preferred_element_type=jnp.float32) + beff_ref[...]
    o_ref[...] = o.astype(o_ref.dtype)


def _apply_ctx_kernel(q_ref, wq_ref, bq_ref, ctx_ref, o_ref, *, compute_dtype):
    cd = compute_dtype
    qp = jnp.dot(q_ref[...].astype(cd), wq_ref[...],
                 preferred_element_type=jnp.float32) + bq_ref[...]      # (tq, d_qk)
    o = jnp.dot(qp.astype(cd), ctx_ref[...],
                preferred_element_type=jnp.float32)                     # (tq, d_v)
    o_ref[...] = o.astype(o_ref.dtype)


# ---------------------------------------------------------------------------
# Host-side wrapper
# ---------------------------------------------------------------------------
def preprocess_params(params, compute_dtype=jnp.float32):
    """One-time repack of torch nn.Linear params: (out,in) -> (in,out); weights
    pre-cast to the MXU compute dtype (so replicated operands are never re-cast
    per tile); biases kept in f32 (added after f32 accumulation)."""
    cd, f32 = compute_dtype, jnp.float32
    return dict(
        wk=jnp.asarray(params["Wk"]).T.astype(cd),
        bk=jnp.asarray(params["bk"]).reshape(1, -1).astype(f32),
        wv=jnp.asarray(params["Wv"]).T.astype(cd),
        bv=jnp.asarray(params["bv"]).reshape(1, -1).astype(f32),
        wq=jnp.asarray(params["Wq"]).T.astype(cd),
        bq=jnp.asarray(params["bq"]).reshape(1, -1).astype(f32),
    )


def multi_head_attention(K, V, Q, prepped, *, n_head, head_qk, head_v,
                         fold_ctx=None, ctx_splits=2, nk_tile=None, q_tile=None):
    """Pallas multi-head attention matching the PyTorch module's forward.

    prepped: output of preprocess_params (weights already in the MXU compute
    dtype).  Returns (Nq, n_head * head_v) in Q.dtype.
    """
    Nk, in_key = K.shape
    Nk_v, in_value = V.shape
    assert Nk_v == Nk, "K and V must have the same number of rows"
    Nq, in_query = Q.shape
    d_qk = n_head * head_qk
    d_v = n_head * head_v
    cd = jnp.dtype(prepped["wq"].dtype)
    in_bytes = jnp.dtype(K.dtype).itemsize
    out_dtype = Q.dtype

    # Fold ctx into the query weights when it lowers kernel-2 FLOPs/bytes:
    #   folded:   in_query * d_v          per output row
    #   unfolded: in_query * d_qk + d_qk * d_v
    if fold_ctx is None:
        fold_ctx = in_query * d_v <= in_query * d_qk + d_qk * d_v

    # Compile-time block-diagonal head mask (tiny replicated operand, f32).
    head_mask = jnp.asarray(np.kron(np.eye(n_head, dtype=np.float32),
                                    np.ones((head_qk, head_v), dtype=np.float32)))

    # ---- Kernel 1: streamed K/V -> block-diagonal per-head contexts ---------
    # Per-row streamed bytes: double-buffered K/V tiles + f32 Kp/Vp live values.
    row1 = 2 * (in_key + in_value) * in_bytes + 4 * (d_qk + d_v)
    tile_nk = _pick_tile(Nk, row1, _STREAM_BUDGET, cap=1024) if nk_tile is None \
        else (Nk if Nk <= nk_tile else max(8, (nk_tile // 8) * 8))
    kt = pl.cdiv(Nk, tile_nk)
    splits = max(1, min(int(ctx_splits), kt))        # leading "parallel" axis (v7x: 2 TCs)
    kt_per_split = pl.cdiv(kt, splits)

    def kv_index_map(c, k):
        # Clamp so over-provisioned tiles (splits * kt_per_split > kt) never read
        # out of bounds; their contribution is zeroed by the in-kernel row mask.
        return (jnp.minimum(c * kt_per_split + k, kt - 1), 0)

    rep1 = lambda shape: pl.BlockSpec(shape, lambda c, k: (0, 0))
    part_spec = lambda shape: pl.BlockSpec((None,) + shape, lambda c, k: (c, 0, 0))
    kv_in_specs = [
        pl.BlockSpec((tile_nk, in_key), kv_index_map),      # K tile
        pl.BlockSpec((tile_nk, in_value), kv_index_map),    # V tile
        rep1((in_key, d_qk)),                               # Wk (all heads fused)
        rep1((1, d_qk)),                                    # bk
        rep1((in_value, d_v)),                              # Wv
        rep1((1, d_v)),                                     # bv
    ]
    ctx_compiler_params = pltpu.CompilerParams(
        dimension_semantics=("parallel", "arbitrary"),
        vmem_limit_bytes=_VMEM_LIMIT)
    ctx_scratch = [pltpu.VMEM((d_qk, d_v), jnp.float32)]    # f32 reduction accumulator

    if fold_ctx:
        weff_parts, beff_parts = pl.pallas_call(
            functools.partial(_ctx_fold_kernel, nk=Nk, tile_nk=tile_nk,
                              kt_per_split=kt_per_split, compute_dtype=cd),
            out_shape=(jax.ShapeDtypeStruct((splits, in_query, d_v), jnp.float32),
                       jax.ShapeDtypeStruct((splits, 1, d_v), jnp.float32)),
            grid_spec=pltpu.PrefetchScalarGridSpec(
                num_scalar_prefetch=0,
                grid=(splits, kt_per_split),
                in_specs=kv_in_specs + [
                    rep1((in_query, d_qk)),                 # Wq
                    rep1((1, d_qk)),                        # bq
                    rep1((d_qk, d_v)),                      # block-diagonal head mask
                ],
                out_specs=(part_spec((in_query, d_v)), part_spec((1, d_v))),
                scratch_shapes=ctx_scratch),
            compiler_params=ctx_compiler_params,
        )(K, V, prepped["wk"], prepped["bk"], prepped["wv"], prepped["bv"],
          prepped["wq"], prepped["bq"], head_mask)
        # Sum the per-core partial reductions in f32; single cast for the MXU.
        weff = weff_parts.sum(axis=0).astype(cd)            # (in_query, d_v)
        beff = beff_parts.sum(axis=0)                       # (1, d_v), f32
    else:
        ctx_parts = pl.pallas_call(
            functools.partial(_ctx_kernel, nk=Nk, tile_nk=tile_nk,
                              kt_per_split=kt_per_split, compute_dtype=cd),
            out_shape=jax.ShapeDtypeStruct((splits, d_qk, d_v), jnp.float32),
            grid_spec=pltpu.PrefetchScalarGridSpec(
                num_scalar_prefetch=0,
                grid=(splits, kt_per_split),
                in_specs=kv_in_specs + [rep1((d_qk, d_v))],
                out_specs=part_spec((d_qk, d_v)),
                scratch_shapes=ctx_scratch),
            compiler_params=ctx_compiler_params,
        )(K, V, prepped["wk"], prepped["bk"], prepped["wv"], prepped["bv"], head_mask)
        ctx = ctx_parts.sum(axis=0).astype(cd)              # (d_qk, d_v)

    # ---- Kernel 2: Q tiles on a "parallel" axis, lane-dense final layout -----
    row2 = 2 * (in_query * in_bytes + d_v * jnp.dtype(out_dtype).itemsize) + 4 * d_v
    tq = _pick_tile(Nq, row2, _STREAM_BUDGET, cap=512) if q_tile is None \
        else (Nq if Nq <= q_tile else max(8, (q_tile // 8) * 8))
    grid_q = (pl.cdiv(Nq, tq),)
    rep2 = lambda shape: pl.BlockSpec(shape, lambda i: (0, 0))
    # TODO(synk): on v7x, pipeline_mode=pl.Buffered(1) on the replicated operands
    # below would halve their (already-fetched-once) VMEM reservation.
    q_compiler_params = pltpu.CompilerParams(
        dimension_semantics=("parallel",),
        vmem_limit_bytes=_VMEM_LIMIT)

    if fold_ctx:
        out = pl.pallas_call(
            functools.partial(_apply_folded_kernel, compute_dtype=cd),
            out_shape=jax.ShapeDtypeStruct((Nq, d_v), out_dtype),
            grid_spec=pltpu.PrefetchScalarGridSpec(
                num_scalar_prefetch=0,
                grid=grid_q,
                in_specs=[pl.BlockSpec((tq, in_query), lambda i: (i, 0)),
                          rep2((in_query, d_v)),            # Weff = Wq @ ctx
                          rep2((1, d_v))],                  # beff = bq @ ctx
                out_specs=pl.BlockSpec((tq, d_v), lambda i: (i, 0))),
            compiler_params=q_compiler_params,
        )(Q, weff, beff)
    else:
        out = pl.pallas_call(
            functools.partial(_apply_ctx_kernel, compute_dtype=cd),
            out_shape=jax.ShapeDtypeStruct((Nq, d_v), out_dtype),
            grid_spec=pltpu.PrefetchScalarGridSpec(
                num_scalar_prefetch=0,
                grid=grid_q,
                in_specs=[pl.BlockSpec((tq, in_query), lambda i: (i, 0)),
                          rep2((in_query, d_qk)),           # Wq
                          rep2((1, d_qk)),                  # bq
                          rep2((d_qk, d_v))],               # block-diagonal ctx
                out_specs=pl.BlockSpec((tq, d_v), lambda i: (i, 0))),
            compiler_params=q_compiler_params,
        )(Q, prepped["wq"], prepped["bq"], ctx)
    return out


def _reference(K, V, Q, params, *, n_head, head_qk, head_v):
    """Plain JAX reference mirroring the PyTorch forward exactly."""
    Kp = (K @ params["Wk"].T + params["bk"]).reshape(K.shape[0], n_head, head_qk)
    Vp = (V @ params["Wv"].T + params["bv"]).reshape(V.shape[0], n_head, head_v)
    Qp = (Q @ params["Wq"].T + params["bq"]).reshape(Q.shape[0], n_head, head_qk)
    outs = []
    for h in range(n_head):
        S = Qp[:, h] @ Kp[:, h].T           # DotProduct affinity, NoNorm
        outs.append(S @ Vp[:, h])
    return jnp.concatenate(outs, axis=1)


if __name__ == "__main__":
    # Small, deterministic shapes (Nk/Nq deliberately not multiples of the
    # forced 8-row tiles below, to exercise partial-tile masking).
    Nk, Nq = 20, 20
    in_key, in_value, in_query = 32, 24, 40
    n_head, head_qk, head_v = 4, 8, 16

    key = jax.random.PRNGKey(0)
    ks = jax.random.split(key, 9)
    K = jax.random.normal(ks[0], (Nk, in_key), jnp.float32)
    V = jax.random.normal(ks[1], (Nk, in_value), jnp.float32)
    Q = jax.random.normal(ks[2], (Nq, in_query), jnp.float32)

    def linear_init(kw, kb, out_f, in_f):
        bound = 1.0 / np.sqrt(in_f)
        W = jax.random.uniform(kw, (out_f, in_f), jnp.float32, -bound, bound)
        b = jax.random.uniform(kb, (out_f,), jnp.float32, -bound, bound)
        return W, b

    Wk, bk = linear_init(ks[3], ks[4], head_qk * n_head, in_key)
    Wv, bv = linear_init(ks[5], ks[6], head_v * n_head, in_value)
    Wq, bq = linear_init(ks[7], ks[8], head_qk * n_head, in_query)
    params = dict(Wk=Wk, bk=bk, Wv=Wv, bv=bv, Wq=Wq, bq=bq)

    ref = _reference(K, V, Q, params, n_head=n_head, head_qk=head_qk, head_v=head_v)

    # f32 MXU path, folded-context kernel 2: tight tolerance.
    prepped = preprocess_params(params)                      # one-time weight repack
    out = multi_head_attention(K, V, Q, prepped,
                               n_head=n_head, head_qk=head_qk, head_v=head_v)
    out = jax.block_until_ready(out)
    assert out.shape == (Nq, n_head * head_v), out.shape
    np.testing.assert_allclose(np.asarray(out), np.asarray(ref), rtol=1e-5, atol=1e-5)

    # f32, un-folded ctx path with forced small tiles: exercises the Nk grid,
    # the 2-way cross-core split, partial-tile row masking and partial Q tiles.
    out_tiled = multi_head_attention(K, V, Q, prepped,
                                     n_head=n_head, head_qk=head_qk, head_v=head_v,
                                     fold_ctx=False, ctx_splits=2, nk_tile=8, q_tile=8)
    out_tiled = jax.block_until_ready(out_tiled)
    np.testing.assert_allclose(np.asarray(out_tiled), np.asarray(ref),
                               rtol=1e-5, atol=1e-5)

    # bf16-operand / f32-accumulate path (recommended on v6e/v7x): loose tolerance.
    prepped_bf16 = preprocess_params(params, compute_dtype=jnp.bfloat16)
    out_bf16 = multi_head_attention(K, V, Q, prepped_bf16,
                                    n_head=n_head, head_qk=head_qk, head_v=head_v)
    out_bf16 = jax.block_until_ready(out_bf16)
    np.testing.assert_allclose(np.asarray(out_bf16), np.asarray(ref),
                               rtol=5e-2, atol=5e-2)

    # TODO(synk): optional mask / MaskedTensor argument `m` is not implemented
    # (module under test uses DotProduct affinity + NoNorm with m=None); the
    # score-matrix-free reassociation does not survive a per-(q,k) mask.
    print("KERNEL_OK")
</pallas_src>

<mosaic_0001>
module attributes {stable_mosaic.version = 11 : i64} {
  func.func @_ctx_fold_kernel(%arg0: i32, %arg1: i32, %arg2: memref<20x32xf32, #tpu.memory_space<vmem>>, %arg3: memref<20x24xf32, #tpu.memory_space<vmem>>, %arg4: memref<32x32xf32, #tpu.memory_space<vmem>>, %arg5: memref<1x32xf32, #tpu.memory_space<vmem>>, %arg6: memref<24x64xf32, #tpu.memory_space<vmem>>, %arg7: memref<1x64xf32, #tpu.memory_space<vmem>>, %arg8: memref<40x32xf32, #tpu.memory_space<vmem>>, %arg9: memref<1x32xf32, #tpu.memory_space<vmem>>, %arg10: memref<32x64xf32, #tpu.memory_space<vmem>>, %arg11: memref<1x40x64xf32, #tpu.memory_space<vmem>>, %arg12: memref<1x1x64xf32, #tpu.memory_space<vmem>>, %arg13: memref<32x64xf32, #tpu.memory_space<vmem>>) attributes {dimension_semantics = [#tpu.dimension_semantics<parallel>, #tpu.dimension_semantics<arbitrary>], iteration_bounds = array<i64: 1, 1>, scalar_prefetch = 0 : i64, scratch_operands = 1 : i64, tpu.core_type = #tpu.core_type<tc>, window_params = [{transform_indices = @transform_0, window_bounds = array<i64: 20, 32>}, {transform_indices = @transform_1, window_bounds = array<i64: 20, 24>}, {pipeline_mode = #tpu.pipeline_mode<synchronous>, transform_indices = @transform_2, window_bounds = array<i64: 32, 32>}, {pipeline_mode = #tpu.pipeline_mode<synchronous>, transform_indices = @transform_3, window_bounds = array<i64: 1, 32>}, {pipeline_mode = #tpu.pipeline_mode<synchronous>, transform_indices = @transform_4, window_bounds = array<i64: 24, 64>}, {pipeline_mode = #tpu.pipeline_mode<synchronous>, transform_indices = @transform_5, window_bounds = array<i64: 1, 64>}, {pipeline_mode = #tpu.pipeline_mode<synchronous>, transform_indices = @transform_6, window_bounds = array<i64: 40, 32>}, {pipeline_mode = #tpu.pipeline_mode<synchronous>, transform_indices = @transform_7, window_bounds = array<i64: 1, 32>}, {pipeline_mode = #tpu.pipeline_mode<synchronous>, transform_indices = @transform_8, window_bounds = array<i64: 32, 64>}, {transform_indices = @transform_9, window_bounds = array<i64: 1, 40, 64>}, {transform_indices = @transform_10, window_bounds = array<i64: 1, 1, 64>}]} {
    %c0_i32 = arith.constant 0 : i32
    %0 = arith.cmpi eq, %arg1, %c0_i32 : i32
    %1 = arith.extui %0 : i1 to i32
    %c0_i32_0 = arith.constant 0 : i32
    %2 = arith.cmpi ne, %1, %c0_i32_0 : i32
    scf.if %2 {
      %cst_23 = arith.constant 0.000000e+00 : f32
      %38 = vector.broadcast %cst_23 : f32 to vector<32x64xf32>
      %c0_24 = arith.constant 0 : index
      %c0_25 = arith.constant 0 : index
      %39 = vector.load %arg13[%c0_24, %c0_25] : memref<32x64xf32, #tpu.memory_space<vmem>>, vector<32x64xf32>
      tpu.vector_store %arg13[%c0_24, %c0_25], %38 {strides = array<i32>} : memref<32x64xf32, #tpu.memory_space<vmem>>, vector<32x64xf32>,
    } else {
    }
    %c0 = arith.constant 0 : index
    %c0_1 = arith.constant 0 : index
    %3 = vector.load %arg2[%c0, %c0_1] : memref<20x32xf32, #tpu.memory_space<vmem>>, vector<20x32xf32>
    %c0_2 = arith.constant 0 : index
    %c0_3 = arith.constant 0 : index
    %4 = vector.load %arg4[%c0_2, %c0_3] : memref<32x32xf32, #tpu.memory_space<vmem>>, vector<32x32xf32>
    %cst = arith.constant dense<0.000000e+00> : vector<20x32xf32>
    %5 = tpu.matmul %3, %4, %cst {dimension_numbers = #tpu.dot_dimension_numbers<[1], [0], [0], [1], [0, 0, 1, 1], [], []>} : vector<20x32xf32>, vector<32x32xf32>, vector<20x32xf32> -> vector<20x32xf32>
    %c0_4 = arith.constant 0 : index
    %c0_5 = arith.constant 0 : index
    %6 = vector.load %arg5[%c0_4, %c0_5] : memref<1x32xf32, #tpu.memory_space<vmem>>, vector<1x32xf32>
    %7 = vector.broadcast %6 : vector<1x32xf32> to vector<20x32xf32>
    %8 = arith.addf %5, %7 : vector<20x32xf32>
    %c0_6 = arith.constant 0 : index
    %c0_7 = arith.constant 0 : index
    %9 = vector.load %arg3[%c0_6, %c0_7] : memref<20x24xf32, #tpu.memory_space<vmem>>, vector<20x24xf32>
    %c0_8 = arith.constant 0 : index
    %c0_9 = arith.constant 0 : index
    %10 = vector.load %arg6[%c0_8, %c0_9] : memref<24x64xf32, #tpu.memory_space<vmem>>, vector<24x64xf32>
    %cst_10 = arith.constant dense<0.000000e+00> : vector<20x64xf32>
    %11 = tpu.matmul %9, %10, %cst_10 {dimension_numbers = #tpu.dot_dimension_numbers<[1], [0], [0], [1], [0, 0, 1, 1], [], []>} : vector<20x24xf32>, vector<24x64xf32>, vector<20x64xf32> -> vector<20x64xf32>
    %c0_11 = arith.constant 0 : index
    %c0_12 = arith.constant 0 : index
    %12 = vector.load %arg7[%c0_11, %c0_12] : memref<1x64xf32, #tpu.memory_space<vmem>>, vector<1x64xf32>
    %13 = vector.broadcast %12 : vector<1x64xf32> to vector<20x64xf32>
    %14 = arith.addf %11, %13 : vector<20x64xf32>
    %c1_i32 = arith.constant 1 : i32
    %15 = arith.muli %arg0, %c1_i32 : i32
    %16 = arith.addi %15, %arg1 : i32
    %c20_i32 = arith.constant 20 : i32
    %17 = arith.muli %16, %c20_i32 : i32
    %18 = tpu.iota {dimensions = array<i32: 0>} : vector<20x1xi32>
    %19 = vector.broadcast %17 : i32 to vector<20x1xi32>
    %20 = arith.addi %19, %18 : vector<20x1xi32>
    %c20_i32_13 = arith.constant 20 : i32
    %21 = vector.broadcast %c20_i32_13 : i32 to vector<20x1xi32>
    %22 = arith.cmpi slt, %20, %21 : vector<20x1xi32>
    %cst_14 = arith.constant 0.000000e+00 : f32
    %23 = vector.shape_cast %22 : vector<20x1xi1> to vector<20x1xi1>
    %24 = vector.broadcast %23 : vector<20x1xi1> to vector<20x32xi1>
    %25 = vector.broadcast %cst_14 : f32 to vector<20x32xf32>
    %26 = arith.select %24, %8, %25 : vector<20x32xi1>, vector<20x32xf32>
    %cst_15 = arith.constant 0.000000e+00 : f32
    %27 = vector.shape_cast %22 : vector<20x1xi1> to vector<20x1xi1>
    %28 = vector.broadcast %27 : vector<20x1xi1> to vector<20x64xi1>
    %29 = vector.broadcast %cst_15 : f32 to vector<20x64xf32>
    %30 = arith.select %28, %14, %29 : vector<20x64xi1>, vector<20x64xf32>
    %c0_16 = arith.constant 0 : index
    %c0_17 = arith.constant 0 : index
    %31 = vector.load %arg13[%c0_16, %c0_17] : memref<32x64xf32, #tpu.memory_space<vmem>>, vector<32x64xf32>
    %cst_18 = arith.constant dense<0.000000e+00> : vector<32x64xf32>
    %32 = tpu.matmul %26, %30, %cst_18 {dimension_numbers = #tpu.dot_dimension_numbers<[0], [0], [1], [1], [0, 1, 1, 1], [], []>} : vector<20x32xf32>, vector<20x64xf32>, vector<32x64xf32> -> vector<32x64xf32>
    %33 = arith.addf %31, %32 : vector<32x64xf32>
    %c0_19 = arith.constant 0 : index
    %c0_20 = arith.constant 0 : index
    %34 = vector.load %arg13[%c0_19, %c0_20] : memref<32x64xf32, #tpu.memory_space<vmem>>, vector<32x64xf32>
    tpu.vector_store %arg13[%c0_19, %c0_20], %33 {strides = array<i32>} : memref<32x64xf32, #tpu.memory_space<vmem>>, vector<32x64xf32>,
    %c0_i32_21 = arith.constant 0 : i32
    %35 = arith.cmpi eq, %arg1, %c0_i32_21 : i32
    %36 = arith.extui %35 : i1 to i32
    %c0_i32_22 = arith.constant 0 : i32
    %37 = arith.cmpi ne, %36, %c0_i32_22 : i32
    scf.if %37 {
      %c0_23 = arith.constant 0 : index
      %c0_24 = arith.constant 0 : index
      %38 = vector.load %arg13[%c0_23, %c0_24] : memref<32x64xf32, #tpu.memory_space<vmem>>, vector<32x64xf32>
      %c0_25 = arith.constant 0 : index
      %c0_26 = arith.constant 0 : index
      %39 = vector.load %arg10[%c0_25, %c0_26] : memref<32x64xf32, #tpu.memory_space<vmem>>, vector<32x64xf32>
      %40 = arith.mulf %38, %39 : vector<32x64xf32>
      %c0_27 = arith.constant 0 : index
      %c0_28 = arith.constant 0 : index
      %41 = vector.load %arg8[%c0_27, %c0_28] : memref<40x32xf32, #tpu.memory_space<vmem>>, vector<40x32xf32>
      %cst_29 = arith.constant dense<0.000000e+00> : vector<40x64xf32>
      %42 = tpu.matmul %41, %40, %cst_29 {dimension_numbers = #tpu.dot_dimension_numbers<[1], [0], [0], [1], [0, 0, 1, 1], [], []>} : vector<40x32xf32>, vector<32x64xf32>, vector<40x64xf32> -> vector<40x64xf32>
      %c0_30 = arith.constant 0 : index
      %c0_31 = arith.constant 0 : index
      %c0_32 = arith.constant 0 : index
      %43 = vector.load %arg11[%c0_30, %c0_31, %c0_32] : memref<1x40x64xf32, #tpu.memory_space<vmem>>, vector<1x40x64xf32>
      %44 = vector.shape_cast %43 : vector<1x40x64xf32> to vector<40x64xf32>
      %45 = vector.shape_cast %42 : vector<40x64xf32> to vector<1x40x64xf32>
      tpu.vector_store %arg11[%c0_30, %c0_31, %c0_32], %45 {strides = array<i32>} : memref<1x40x64xf32, #tpu.memory_space<vmem>>, vector<1x40x64xf32>,
      %c0_33 = arith.constant 0 : index
      %c0_34 = arith.constant 0 : index
      %46 = vector.load %arg9[%c0_33, %c0_34] : memref<1x32xf32, #tpu.memory_space<vmem>>, vector<1x32xf32>
      %47 = vector.shape_cast %46 : vector<1x32xf32> to vector<1x32xf32>
      %48 = vector.broadcast %47 : vector<1x32xf32> to vector<8x32xf32>
      %cst_35 = arith.constant dense<0.000000e+00> : vector<8x64xf32>
      %49 = tpu.matmul %48, %40, %cst_35 {dimension_numbers = #tpu.dot_dimension_numbers<[1], [0], [0], [1], [0, 0, 1, 1], [], []>} : vector<8x32xf32>, vector<32x64xf32>, vector<8x64xf32> -> vector<8x64xf32>
      %50 = vector.extract_strided_slice %49 {offsets = [0, 0], sizes = [1, 64], strides = [1, 1]} : vector<8x64xf32> to vector<1x64xf32>
      %c0_36 = arith.constant 0 : index
      %c0_37 = arith.constant 0 : index
      %c0_38 = arith.constant 0 : index
      %51 = vector.load %arg12[%c0_36, %c0_37, %c0_38] : memref<1x1x64xf32, #tpu.memory_space<vmem>>, vector<1x1x64xf32>
      %52 = vector.shape_cast %51 : vector<1x1x64xf32> to vector<1x64xf32>
      %53 = vector.shape_cast %50 : vector<1x64xf32> to vector<1x1x64xf32>
      tpu.vector_store %arg12[%c0_36, %c0_37, %c0_38], %53 {strides = array<i32>} : memref<1x1x64xf32, #tpu.memory_space<vmem>>, vector<1x1x64xf32>,
    } else {
    }
    return
  }
  func.func @transform_0(%arg0: i32, %arg1: i32) -> (i32, i32) {
    %c1_i32 = arith.constant 1 : i32
    %0 = arith.muli %arg0, %c1_i32 : i32
    %1 = arith.addi %0, %arg1 : i32
    %c0_i32 = arith.constant 0 : i32
    %2 = arith.minsi %1, %c0_i32 : i32
    %c0_i32_0 = arith.constant 0 : i32
    %c0_i32_1 = arith.constant 0 : i32
    return %2, %c0_i32_0 : i32, i32
  }
  func.func @transform_1(%arg0: i32, %arg1: i32) -> (i32, i32) {
    %c1_i32 = arith.constant 1 : i32
    %0 = arith.muli %arg0, %c1_i32 : i32
    %1 = arith.addi %0, %arg1 : i32
    %c0_i32 = arith.constant 0 : i32
    %2 = arith.minsi %1, %c0_i32 : i32
    %c0_i32_0 = arith.constant 0 : i32
    %c0_i32_1 = arith.constant 0 : i32
    return %2, %c0_i32_0 : i32, i32
  }
  func.func @transform_2(%arg0: i32, %arg1: i32) -> (i32, i32) {
    %c0_i32 = arith.constant 0 : i32
    %c0_i32_0 = arith.constant 0 : i32
    %c0_i32_1 = arith.constant 0 : i32
    return %c0_i32, %c0_i32_0 : i32, i32
  }
  func.func @transform_3(%arg0: i32, %arg1: i32) -> (i32, i32) {
    %c0_i32 = arith.constant 0 : i32
    %c0_i32_0 = arith.constant 0 : i32
    %c0_i32_1 = arith.constant 0 : i32
    return %c0_i32, %c0_i32_0 : i32, i32
  }
  func.func @transform_4(%arg0: i32, %arg1: i32) -> (i32, i32) {
    %c0_i32 = arith.constant 0 : i32
    %c0_i32_0 = arith.constant 0 : i32
    %c0_i32_1 = arith.constant 0 : i32
    return %c0_i32, %c0_i32_0 : i32, i32
  }
  func.func @transform_5(%arg0: i32, %arg1: i32) -> (i32, i32) {
    %c0_i32 = arith.constant 0 : i32
    %c0_i32_0 = arith.constant 0 : i32
    %c0_i32_1 = arith.constant 0 : i32
    return %c0_i32, %c0_i32_0 : i32, i32
  }
  func.func @transform_6(%arg0: i32, %arg1: i32) -> (i32, i32) {
    %c0_i32 = arith.constant 0 : i32
    %c0_i32_0 = arith.constant 0 : i32
    %c0_i32_1 = arith.constant 0 : i32
    return %c0_i32, %c0_i32_0 : i32, i32
  }
  func.func @transform_7(%arg0: i32, %arg1: i32) -> (i32, i32) {
    %c0_i32 = arith.constant 0 : i32
    %c0_i32_0 = arith.constant 0 : i32
    %c0_i32_1 = arith.constant 0 : i32
    return %c0_i32, %c0_i32_0 : i32, i32
  }
  func.func @transform_8(%arg0: i32, %arg1: i32) -> (i32, i32) {
    %c0_i32 = arith.constant 0 : i32
    %c0_i32_0 = arith.constant 0 : i32
    %c0_i32_1 = arith.constant 0 : i32
    return %c0_i32, %c0_i32_0 : i32, i32
  }
  func.func @transform_9(%arg0: i32, %arg1: i32) -> (i32, i32, i32) {
    %c0_i32 = arith.constant 0 : i32
    %c0_i32_0 = arith.constant 0 : i32
    %c0_i32_1 = arith.constant 0 : i32
    return %arg0, %c0_i32, %c0_i32_0 : i32, i32, i32
  }
  func.func @transform_10(%arg0: i32, %arg1: i32) -> (i32, i32, i32) {
    %c0_i32 = arith.constant 0 : i32
    %c0_i32_0 = arith.constant 0 : i32
    %c0_i32_1 = arith.constant 0 : i32
    return %arg0, %c0_i32, %c0_i32_0 : i32, i32, i32
  }
}

</mosaic_0001>

<bundles_post_ra>
// kernel: tpu_custom_call.1
= control target key start
LH: loop header
LB: loop body
LE: loop exit
PB: predicated region body
PF: predicated region fallthrough
CT: control target
= control target key end

     0   :  { %16 = vsyncpa [#allocation4], 0  ;;  %s1550_s0 = inlined_call_operand.hbm [shape: f32[20,32], index: 0, kind: input, shape index: {}]   ;;  %s1551_s1 = inlined_call_operand.hbm [shape: f32[20,24], index: 1, kind: input, shape index: {}]   ;;  %s1552_s2 = inlined_call_operand.hbm [shape: f32[32,32], index: 2, kind: input, shape index: {}]   ;;  %s1553_s3 = inlined_call_operand.hbm [shape: f32[1,32], index: 3, kind: input, shape index: {}]   ;;  %s1554_s4 = inlined_call_operand.hbm [shape: f32[24,64], index: 4, kind: input, shape index: {}]   ;;  %s1555_s5 = inlined_call_operand.hbm [shape: f32[1,64], index: 5, kind: input, shape index: {}]   ;;  %s1556_s6 = inlined_call_operand.hbm [shape: f32[40,32], index: 6, kind: input, shape index: {}]   ;;  %s1557_s7 = inlined_call_operand.hbm [shape: f32[1,32], index: 7, kind: input, shape index: {}]   ;;  %s1558_s8 = inlined_call_operand.hbm [shape: f32[32,64], index: 8, kind: input, shape index: {}]   ;;  %s1559_s9 = inlined_call_operand.hbm [shape: f32[1,40,64], index: 9, kind: output, shape index: {0}]   ;;  %s1560_s10 = inlined_call_operand.hbm [shape: f32[1,1,64], index: 10, kind: output, shape index: {1}]  }
   0x1   :  { %17 = vsyncpa [#allocation7], 0 }
   0x2   :  { %18 = vsyncpa [#allocation10], 0 }
   0x3   :  { %19 = vsyncpa [#allocation13], 0 }
   0x4   :  { %20 = vsyncpa [#allocation16], 0 }
   0x5   :  { %21 = vsyncpa [#allocation5], 0 }
   0x6   :  { %22 = vsyncpa [#allocation20], 0  ;;  %s1242_s13 = smov [#allocation6]   ;;  %s1243_s15 = smov [#allocation9]  }
   0x7   :  { %s52_s14 = sshll.u32 %s1242_s13, 4  ;;  %s77_s16 = sshll.u32 %s1243_s15, 4  ;;  %s53_s14 = int_to_ptr.vmem [resolvable:$true] %s52_s14  ;;  %s1313_s16 = int_to_ptr.vmem [resolvable:$true] %s77_s16 }
   0x8   :  { %s986_s19 = scalar_lea.hbm %s1551_s1, 384 }
   0x9   :  { %p987_p0 = scmp.ne.s32.totalorder %s1551_s1, %s986_s19  ;;  %p990_p1 = scmp.lt.u32.totalorder %s986_s19, %s1551_s1 }
   0xb   :  { %p992_p2 = pnand %p990_p1, %p987_p0 }
   0xd   :  { %995 = shalt.err (!%p992_p2)
}
   0xe   :  { %s996_s24 = scalar_lea.vmem %s53_s14, 384  ;;  %p1001_p4 = scmp.lt.s32.totalorder %s53_s14, %s53_s14 }
   0xf   :  { %p997_p3 = scmp.ne.s32.totalorder %s53_s14, %s996_s24  ;;  %p1002_p5 = scmp.lt.s32.totalorder %s996_s24, %s996_s24 }
  0x11   :  { %p1003_p6 = por %p1002_p5, %p1001_p4 }
  0x13   :  { %p1004_p7 = pnand %p1003_p6, %p997_p3 }
  0x15   :  { %1007 = shalt.err (!%p1004_p7)
}
  0x16   :  { %s1244_s25 = smov 128   ;;  %s1245_s26 = smov 8  }
  0x17   :  { %58 = dma.hbm_to_vmem [thread:$0]  %s1551_s1, 384, %s53_s14, [#allocation7], %s1244_s25, %s1244_s25, %s1245_s26  }
  0x18   :  { %s1008_s11 = scalar_lea.hbm %s1553_s3, 16 }
  0x19   :  { %p1009_p8 = scmp.ne.s32.totalorder %s1553_s3, %s1008_s11  ;;  %p1012_p9 = scmp.lt.u32.totalorder %s1008_s11, %s1553_s3 }
  0x1b   :  { %p1014_p10 = pnand %p1012_p9, %p1009_p8 }
  0x1d   :  { %1017 = shalt.err (!%p1014_p10)
}
  0x1e   :  { %s1018_s18 = scalar_lea.vmem %s1313_s16, 16  ;;  %s1022_s1 = scalar_lea.vmem %s1313_s16, 32 }
  0x1f   :  { %p1019_p11 = scmp.ne.s32.totalorder %s1313_s16, %s1018_s18  ;;  %p1023_p12 = scmp.lt.s32.totalorder %s1313_s16, %s1313_s16 }
  0x20   :  { %p1024_p13 = scmp.lt.s32.totalorder %s1022_s1, %s1018_s18 }
  0x22   :  { %p1025_p0 = por %p1024_p13, %p1023_p12 }
  0x24   :  { %p1026_p1 = pnand %p1025_p0, %p1019_p11 }
  0x26   :  { %1029 = shalt.err (!%p1026_p1)
}
  0x27   :  { %80 = dma.hbm_to_vmem [thread:$0]  %s1553_s3, 16, %s1313_s16, [#allocation10]  }
  0x28   :  { %s1246_s20 = smov [#allocation12]   ;;  %s1247_s22 = smov [#allocation15]  }
  0x29   :  { %s99_s21 = sshll.u32 %s1246_s20, 4  ;;  %s121_s23 = sshll.u32 %s1247_s22, 4  ;;  %s100_s21 = int_to_ptr.vmem [resolvable:$true] %s99_s21  ;;  %s122_s23 = int_to_ptr.vmem [resolvable:$true] %s121_s23 }
  0x2a   :  { %s1030_s28 = scalar_lea.hbm %s1555_s5, 16 }
  0x2b   :  { %p1031_p2 = scmp.ne.s32.totalorder %s1555_s5, %s1030_s28  ;;  %p1034_p3 = scmp.lt.u32.totalorder %s1030_s28, %s1555_s5 }
  0x2d   :  { %p1036_p4 = pnand %p1034_p3, %p1031_p2 }
  0x2f   :  { %1039 = shalt.err (!%p1036_p4)
}
  0x30   :  { %s1040_s3 = scalar_lea.vmem %s100_s21, 16  ;;  %s1044_s16 = scalar_lea.vmem %s100_s21, 32 }
  0x31   :  { %p1041_p5 = scmp.ne.s32.totalorder %s100_s21, %s1040_s3  ;;  %p1045_p6 = scmp.lt.s32.totalorder %s100_s21, %s100_s21 }
  0x32   :  { %p1046_p7 = scmp.lt.s32.totalorder %s1044_s16, %s1040_s3 }
  0x34   :  { %p1047_p8 = por %p1046_p7, %p1045_p6 }
  0x36   :  { %p1048_p9 = pnand %p1047_p8, %p1041_p5 }
  0x38   :  { %1051 = shalt.err (!%p1048_p9)
}
  0x39   :  { %102 = dma.hbm_to_vmem [thread:$0]  %s1555_s5, 16, %s100_s21, [#allocation13]  }
  0x3a   :  { %s1052_s1 = scalar_lea.hbm %s1557_s7, 16 }
  0x3b   :  { %p1053_p10 = scmp.ne.s32.totalorder %s1557_s7, %s1052_s1  ;;  %p1056_p11 = scmp.lt.u32.totalorder %s1052_s1, %s1557_s7 }
  0x3d   :  { %p1058_p12 = pnand %p1056_p11, %p1053_p10 }
  0x3f   :  { %1061 = shalt.err (!%p1058_p12)
}
  0x40   :  { %s1062_s24 = scalar_lea.vmem %s122_s23, 16  ;;  %s1066_s27 = scalar_lea.vmem %s122_s23, 32 }
  0x41   :  { %p1063_p13 = scmp.ne.s32.totalorder %s122_s23, %s1062_s24  ;;  %p1067_p0 = scmp.lt.s32.totalorder %s122_s23, %s122_s23 }
  0x42   :  { %p1068_p1 = scmp.lt.s32.totalorder %s1066_s27, %s1062_s24 }
  0x44   :  { %p1069_p2 = por %p1068_p1, %p1067_p0 }
  0x46   :  { %p1070_p3 = pnand %p1069_p2, %p1063_p13 }
  0x48   :  { %1073 = shalt.err (!%p1070_p3)
}
  0x49   :  { %124 = dma.hbm_to_vmem [thread:$0]  %s1557_s7, 16, %s122_s23, [#allocation16]  }
  0x4a   :  { %s1248_s28 = smov [#allocation3]   ;;  %s1249_s30 = smov [#allocation8]  }
  0x4b   :  { %s34_s29 = sshll.u32 %s1248_s28, 4  ;;  %s64_s11 = sshll.u32 %s1249_s30, 4  ;;  %s35_s29 = int_to_ptr.vmem [resolvable:$true] %s34_s29  ;;  %s1372_s11 = int_to_ptr.vmem [resolvable:$true] %s64_s11 }
  0x4c   :  { %s1074_s16 = scalar_lea.hbm %s1550_s0, 384 }
  0x4d   :  { %p1075_p4 = scmp.ne.s32.totalorder %s1550_s0, %s1074_s16  ;;  %p1078_p5 = scmp.lt.u32.totalorder %s1074_s16, %s1550_s0 }
  0x4f   :  { %p1080_p6 = pnand %p1078_p5, %p1075_p4 }
  0x51   :  { %1083 = shalt.err (!%p1080_p6)
}
  0x52   :  { %s1084_s7 = scalar_lea.vmem %s35_s29, 384  ;;  %p1089_p8 = scmp.lt.s32.totalorder %s35_s29, %s35_s29 }
  0x53   :  { %p1085_p7 = scmp.ne.s32.totalorder %s35_s29, %s1084_s7  ;;  %p1090_p9 = scmp.lt.s32.totalorder %s1084_s7, %s1084_s7 }
  0x55   :  { %p1091_p10 = por %p1090_p9, %p1089_p8 }
  0x57   :  { %p1092_p11 = pnand %p1091_p10, %p1085_p7 }
  0x59   :  { %1095 = shalt.err (!%p1092_p11)
}
  0x5a   :  { %40 = dma.hbm_to_vmem [thread:$0]  %s1550_s0, 384, %s35_s29, [#allocation4], %s1244_s25, %s1244_s25, %s1245_s26  }
  0x5b   :  { %s1096_s20 = scalar_lea.hbm %s1552_s2, 512 }
  0x5c   :  { %p1097_p12 = scmp.ne.s32.totalorder %s1552_s2, %s1096_s20  ;;  %p1100_p13 = scmp.lt.u32.totalorder %s1096_s20, %s1552_s2 }
  0x5e   :  { %p1102_p0 = pnand %p1100_p13, %p1097_p12 }
  0x60   :  { %1105 = shalt.err (!%p1102_p0)
}
  0x61   :  { %s1106_s21 = scalar_lea.vmem %s1372_s11, 512  ;;  %p1111_p2 = scmp.lt.s32.totalorder %s1372_s11, %s1372_s11 }
  0x62   :  { %p1107_p1 = scmp.ne.s32.totalorder %s1372_s11, %s1106_s21  ;;  %p1112_p3 = scmp.lt.s32.totalorder %s1106_s21, %s1106_s21 }
  0x64   :  { %p1113_p4 = por %p1112_p3, %p1111_p2 }
  0x66   :  { %p1114_p5 = pnand %p1113_p4, %p1107_p1 }
  0x68   :  { %1117 = shalt.err (!%p1114_p5)
}
  0x69   :  { %70 = dma.hbm_to_vmem [thread:$0]  %s1552_s2, 512, %s1372_s11, [#allocation7], %s1244_s25, %s1244_s25, %s1245_s26  }
  0x6a   :  { %s1250_s29 = smov [#allocation11]   ;;  %s1251_s12 = smov [#allocation14]  }
  0x6b   :  { %s86_s30 = sshll.u32 %s1250_s29, 4  ;;  %s108_s3 = sshll.u32 %s1251_s12, 4  ;;  %s87_s30 = int_to_ptr.vmem [resolvable:$true] %s86_s30  ;;  %s1409_s3 = int_to_ptr.vmem [resolvable:$true] %s108_s3 }
  0x6c   :  { %s1118_s15 = scalar_lea.hbm %s1554_s4, 384 }
  0x6d   :  { %p1119_p6 = scmp.ne.s32.totalorder %s1554_s4, %s1118_s15  ;;  %p1122_p7 = scmp.lt.u32.totalorder %s1118_s15, %s1554_s4 }
  0x6f   :  { %p1124_p8 = pnand %p1122_p7, %p1119_p6 }
  0x71   :  { %1127 = shalt.err (!%p1124_p8)
}
  0x72   :  { %s1128_s2 = scalar_lea.vmem %s87_s30, 384  ;;  %p1133_p10 = scmp.lt.s32.totalorder %s87_s30, %s87_s30 }
  0x73   :  { %p1129_p9 = scmp.ne.s32.totalorder %s87_s30, %s1128_s2  ;;  %p1134_p11 = scmp.lt.s32.totalorder %s1128_s2, %s1128_s2 }
  0x75   :  { %p1135_p12 = por %p1134_p11, %p1133_p10 }
  0x77   :  { %p1136_p13 = pnand %p1135_p12, %p1129_p9 }
  0x79   :  { %1139 = shalt.err (!%p1136_p13)
}
  0x7a   :  { %92 = dma.hbm_to_vmem [thread:$0]  %s1554_s4, 384, %s87_s30, [#allocation10], %s1244_s25, %s1244_s25, %s1245_s26  }
  0x7b   :  { %s1140_s20 = scalar_lea.hbm %s1556_s6, 640 }
  0x7c   :  { %p1141_p0 = scmp.ne.s32.totalorder %s1556_s6, %s1140_s20  ;;  %p1144_p1 = scmp.lt.u32.totalorder %s1140_s20, %s1556_s6 }
  0x7e   :  { %p1146_p2 = pnand %p1144_p1, %p1141_p0 }
  0x80   :  { %1149 = shalt.err (!%p1146_p2)
}
  0x81   :  { %s1150_s21 = scalar_lea.vmem %s1409_s3, 640  ;;  %p1155_p4 = scmp.lt.s32.totalorder %s1409_s3, %s1409_s3 }
  0x82   :  { %p1151_p3 = scmp.ne.s32.totalorder %s1409_s3, %s1150_s21  ;;  %p1156_p5 = scmp.lt.s32.totalorder %s1150_s21, %s1150_s21 }
  0x84   :  { %p1157_p6 = por %p1156_p5, %p1155_p4 }
  0x86   :  { %p1158_p7 = pnand %p1157_p6, %p1151_p3 }
  0x88   :  { %1161 = shalt.err (!%p1158_p7)
}
  0x89   :  { %114 = dma.hbm_to_vmem [thread:$0]  %s1556_s6, 640, %s1409_s3, [#allocation13], %s1244_s25, %s1244_s25, %s1245_s26  }
  0x8a   :  { %s1252_s28 = smov [#allocation17]   ;;  %s1162_s16 = scalar_lea.hbm %s1558_s8, 512 }
  0x8b   :  { %s130_s29 = sshll.u32 %s1252_s28, 4  ;;  %p1163_p8 = scmp.ne.s32.totalorder %s1558_s8, %s1162_s16  ;;  %s131_s29 = int_to_ptr.vmem [resolvable:$true] %s130_s29 }
  0x8c   :  { %p1166_p9 = scmp.lt.u32.totalorder %s1162_s16, %s1558_s8 }
  0x8e   :  { %p1168_p10 = pnand %p1166_p9, %p1163_p8 }
  0x90   :  { %1171 = shalt.err (!%p1168_p10)
}
  0x91   :  { %s1172_s7 = scalar_lea.vmem %s131_s29, 512  ;;  %p1177_p12 = scmp.lt.s32.totalorder %s131_s29, %s131_s29 }
  0x92   :  { %p1173_p11 = scmp.ne.s32.totalorder %s131_s29, %s1172_s7  ;;  %p1178_p13 = scmp.lt.s32.totalorder %s1172_s7, %s1172_s7 }
  0x94   :  { %p1179_p0 = por %p1178_p13, %p1177_p12 }
  0x96   :  { %p1180_p1 = pnand %p1179_p0, %p1173_p11 }
  0x98   :  { %1183 = shalt.err (!%p1180_p1)
}
  0x99   :  { %136 = dma.hbm_to_vmem [thread:$0]  %s1558_s8, 512, %s131_s29, [#allocation16], %s1244_s25, %s1244_s25, %s1245_s26  }
  0x9a   :  { %1228 = dma.done.wait [#allocation4], 384  }
  0x9b   :  { %1229 = vsyncadd [#allocation4], 4294966912 }
  0x9c   :  { %1230 = dma.done.wait [#allocation7], 896  }
  0x9d   :  { %1231 = vsyncadd [#allocation7], 4294966400 }
  0x9e   :  { %1232 = dma.done.wait [#allocation10], 400  }
  0x9f   :  { %1233 = vsyncadd [#allocation10], 4294966896 }
  0xa0   :  { %1234 = dma.done.wait [#allocation13], 656  }
  0xa1   :  { %1235 = vsyncadd [#allocation13], 4294966640 }
  0xa2   :  { %1236 = dma.done.wait [#allocation16], 528  }
  0xa3   :  { %1237 = vsyncadd [#allocation16], 4294966768  ;;  %v1253_v0 = vmov 0.0|0.0   ;;  %vm1254_vm0 = vmmov 0   ;;  %v1255_v1 = vmov 0.0   ;;  %v184_v2 = vld [vmem:[#allocation8] sm:$0xff]  ;;  %v390_v18 = vlaneseq }
  0xa4   :  { %941 = vmatprep.subr.bf16.mxu0 %v1253_v0  ;;  %966 = vmatprep.subr.bf16.mxu1 %v1253_v0  ;;  %v185_v3 = vld [vmem:[#allocation8 + $0x8] sm:$0xff]  ;;  %v186_v4 = vld [vmem:[#allocation8 + $0x10] sm:$0xff]  ;;  %v187_v6 = vld [vmem:[#allocation8 + $0x18] sm:$0xff]  ;;  %vm195_vm1 = vcmask 261120   ;;  %vm298_vm2 = vcmask 195584   ;;  %vm462_vm4 = vcmask 1043456  }
  0xa5   :  { %871 = vmatprep.mubr.msk.f32.mxu0 %vm1254_vm0, %v1255_v1  ;;  %877 = vmatprep.mubr.msk.f32.mxu1 %vm1254_vm0, %v1255_v1  ;;  %v942_v5 = vpack.c.bf16 %v185_v3, %v184_v2  ;;  %v945_v7 = vpack.c.bf16 %v187_v6, %v186_v4  ;;  %v288_v8 = vld [vmem:[#allocation11] sm:$0xff]  ;;  %v289_v9 = vld [vmem:[#allocation11 + $0x8] sm:$0xff]  ;;  %v182_v13 = vld [vmem:[#allocation3 + $0x8] sm:$0xff]  ;;  %v391_v19 = vshrl.u32 %v390_v18, 7  ;;  %vm176_vm5 = vcmask 523264   ;;  %s1256_s8 = smov [#allocation19]  }
  0xa6   :  { %v181_v10 = vld [vmem:[#allocation3] sm:$0xff]  ;;  %v183_v11 = vld [vmem:[#allocation3 + $0x10] sm:$0xf]  ;;  %v948_v12 = vpack.c.bf16 %v289_v9, %v288_v8  ;;  %v285_v15 = vld [vmem:[#allocation6] sm:$0xff]  ;;  %178 = vst.msk [vmem:[#allocation2 + $0x8] sm:$0xff] %vm176_vm5, %v1255_v1  ;;  %vm449_vm6 = vcmask 162816  }
  0xa7   :  { %943 = vmatpush3.bf16.msra.mxu0 %v942_v5  ;;  %968 = vmatpush3.bf16.msra.mxu1 %v942_v5  ;;  %v290_v14 = vld [vmem:[#allocation11 + $0x10] sm:$0xff]  ;;  %v809_v20 = vld [vmem:[#allocation9] ss:$0 sm:$0xff]  ;;  %v393_v26 = vadd.s32 16, %v391_v19  ;;  %v813_v31 = vld [vmem:[#allocation12] ss:$0 sm:$0xff] }
  0xa8   :  { %944 = vmatprep.subr.bf16.mxu0 %v1253_v0  ;;  %967 = vmatprep.subr.bf16.mxu1 %v1253_v0  ;;  %v286_v16 = vld [vmem:[#allocation6 + $0x8] sm:$0xff]  ;;  %v287_v17 = vld [vmem:[#allocation6 + $0x10] sm:$0xf]  ;;  %177 = vst.msk [vmem:[#allocation2] sm:$0xff] %vm176_vm5, %v1255_v1  ;;  %179 = vst.msk [vmem:[#allocation2 + $0x10] sm:$0xff] %vm176_vm5, %v1255_v1  ;;  %s788_s23 = sshll.u32 %s1256_s8, 4  ;;  %s789_s23 = int_to_ptr.vmem [resolvable:$true] %s788_s23 }
  0xa9   :  { %vm400_vm3 = vcmp.lt.s32.totalorder %v393_v26, 20  ;;  %180 = vst.msk [vmem:[#allocation2 + $0x18] sm:$0xff] %vm176_vm5, %v1255_v1  ;;  %v568_v57 = vld [vmem:[#allocation17 + $0x8] sm:$0xff]  ;;  %v567_v60 = vld [vmem:[#allocation17] sm:$0xff]  ;;  %v570_v5 = vld [vmem:[#allocation17 + $0x18] sm:$0xff]  ;;  %vm768_vm7 = vcmask 516096   ;;  %p1189_p3 = scmp.lt.s32.totalorder %s789_s23, %s789_s23 }
  0xaa   :  { %v569_v6 = vld [vmem:[#allocation17 + $0x10] sm:$0xff]  ;;  %s1184_s2 = scalar_lea.vmem %s789_s23, 16  ;;  %s1188_s11 = scalar_lea.vmem %s789_s23, 32 }
  0xab   :  { %946 = vmatpush3.bf16.msra.mxu0 %v945_v7  ;;  %969 = vmatpush3.bf16.msra.mxu1 %v945_v7  ;;  %p1185_p2 = scmp.ne.s32.totalorder %s789_s23, %s1184_s2  ;;  %p1190_p4 = scmp.lt.s32.totalorder %s1188_s11, %s1184_s2 }
  0xac   :  { %947 = vmatprep.subr.bf16.mxu1 %v1253_v0  ;;  %954 = vmatprep.subr.bf16.mxu0 %v1253_v0 }
  0xad   :  { %v414_v48 = vld [vmem:[#allocation2 + $0x8] sm:$0xff]  ;;  %p1191_p5 = por %p1190_p4, %p1189_p3 }
  0xae   :  { %872 = vmatmul.mubr.msk.f32.vlgmr.msra.gmra.mrb[0].mxu0 %vm195_vm1, %v181_v10  ;;  %878 = vmatmul.mubr.msk.f32.vlgmr.msra.gmra.mrb[0].mxu1 %vm195_vm1, %v183_v11 }
  0xaf   :  { %874 = vmatprep.mubr.msk.f32.mxu0 %vm1254_vm0, %v1255_v1  ;;  %949 = vmatpush3.bf16.msra.mxu1 %v948_v12  ;;  %v413_v49 = vld [vmem:[#allocation2] sm:$0xff]  ;;  %v415_v55 = vld [vmem:[#allocation2 + $0x10] sm:$0xff]  ;;  %p1192_p6 = pnand %p1191_p5, %p1185_p2 }
  0xb0   :  { %884 = vmatprep.subr.mxu1 %v1255_v1  ;;  %886 = vmatprep.mubr.msk.f32.mxu1 %vm1254_vm0, %v1255_v1  ;;  %v416_v54 = vld [vmem:[#allocation2 + $0x18] sm:$0xff]  ;;  %v575_v12 = vld [vmem:[#allocation14] sm:$0xff] }
  0xb2   :  { %875 = vmatmul.mubr.msk.f32.gmra.mrb[2].mxu0 %vm195_vm1, %v182_v13  ;;  %v827_v13 = vld [vmem:[#allocation15] ss:$0 sm:$0xff] }
  0xb3   :  { %885 = vmatpush3.msra.mxu1 %v290_v14  ;;  %915 = vmatprep.mubr.msk.f32.mxu0 %vm1254_vm0, %v1255_v1  ;;  %v576_v14 = vld [vmem:[#allocation14 + $0x8] sm:$0xff] }
  0xb4   :  { %887 = vmatmul.mubr.msk.f32.vlgmr.msra.gmra.mrb[2].mxu1 %vm298_vm2, %v285_v15  ;;  %v578_v15 = vld [vmem:[#allocation14 + $0x18] sm:$0xff] }
  0xb5   :  { %889 = vmatprep.mubr.msk.f32.mxu1 %vm1254_vm0, %v1255_v1 }
  0xb8   :  { %890 = vmatmul.mubr.msk.f32.gmra.mrb[4].mxu1 %vm298_vm2, %v286_v16  ;;  %v579_v16 = vld [vmem:[#allocation14 + $0x20] sm:$0xff] }
  0xb9   :  { %892 = vmatprep.mubr.msk.f32.mxu1 %vm1254_vm0, %v1255_v1 }
  0xbc   :  { %893 = vmatmul.mubr.msk.f32.gmra.mrb[6].mxu1 %vm298_vm2, %v287_v17 }
 0x181   :  { %v271_v21 = vpop.f32.mrb[0].mxu0  ;;  %v281_v22 = vpop.f32.mrb[0].mxu1 }
 0x182   :  { %v873_v23 = vpop.f32.mrb[1].mxu0  ;;  %v272_v24 = vadd.f32 %v809_v20, %v271_v21  ;;  %v879_v25 = vpop.f32.mrb[1].mxu1  ;;  %v282_v28 = vadd.f32 %v809_v20, %v281_v22 }
 0x184   :  { %417 = vxpose.xlu0.b32.start [1/3] (short) (narrow) %v272_v24, 32  ;;  %v409_v34 = vsel %vm400_vm3, %v282_v28, 0.0 }
 0x185   :  { %v276_v27 = vpop.f32.mrb[2].mxu0 }
 0x186   :  { %v277_v29 = vadd.f32 %v809_v20, %v276_v27  ;;  %v876_v30 = vpop.f32.mrb[3].mxu0 }
 0x187   :  { %v374_v32 = vpop.f32.mrb[2].mxu1 }
 0x188   :  { %418 = vxpose.xlu0.b32.cont [2/3] (short) (narrow) %v277_v29, 32  ;;  %v888_v33 = vpop.f32.mrb[3].mxu1  ;;  %v375_v35 = vadd.f32 %v813_v31, %v374_v32 }
 0x18b   :  { %v379_v36 = vpop.f32.mrb[4].mxu1 }
 0x18c   :  { %419 = vxpose.xlu0.b32.end [3/3] (short) (narrow) %v409_v34, 32  ;;  %v380_v37 = vadd.f32 %v813_v31, %v379_v36  ;;  %v891_v38 = vpop.f32.mrb[5].mxu1 }
 0x18e   :  { %v950_v39 = vpack.c.bf16 %v380_v37, %v375_v35 }
 0x18f   :  { %v384_v40 = vpop.f32.mrb[6].mxu1 }
 0x190   :  { %951 = vmatprep.subr.bf16.mxu1 %v950_v39  ;;  %v385_v41 = vadd.f32 %v813_v31, %v384_v40  ;;  %v894_v42 = vpop.f32.mrb[7].mxu1 }
 0x191   :  { %953 = vmatpush3.bf16.msra.mxu1 %v950_v39 }
 0x192   :  { %v412_v43 = vsel %vm400_vm3, %v385_v41, 0.0 }
 0x193   :  { %899 = vmatprep.subr.msk.mxu1 %vm462_vm4, %v412_v43 }
 0x195   :  { %900 = vmatpush3.msk.msra.mxu1 %vm462_vm4, %v412_v43 }
 0x196   :  { %960 = vmatprep.subr.bf16.mxu1 %v1253_v0 }
 0x204   :  { %v433_v44 = vpop.trf.xlu0 }
 0x205   :  { %901 = vmatprep.mubr.msk.f32.mxu1 %vm449_vm6, %v433_v44 }
 0x208   :  { %v434_v45 = vpop.trf.xlu0 }
 0x209   :  { %902 = vmatmul.mubr.msk.f32.vlgmr.msra.gmra.mrb[8].mxu1 %vm449_vm6, %v434_v45 }
 0x20c   :  { %v435_v46 = vpop.trf.xlu0 }
 0x20d   :  { %904 = vmatprep.mubr.msk.f32.mxu1 %vm449_vm6, %v435_v46 }
 0x210   :  { %v436_v47 = vpop.trf.xlu0 }
 0x211   :  { %905 = vmatmul.mubr.msk.f32.gmra.mrb[10].mxu1 %vm449_vm6, %v436_v47 }
 0x212   :  { %938 = vmatprep.mubr.msk.f32.mxu1 %vm1254_vm0, %v1255_v1 }
 0x2dc   :  { %v903_v50 = vpop.f32.mrb[8].mxu1 }
 0x2dd   :  { %v552_v51 = vadd.f32 %v903_v50, %v414_v48  ;;  %v532_v52 = vpop.f32.mrb[9].mxu1 }
 0x2de   :  { %v551_v53 = vadd.f32 %v532_v52, %v413_v49 }
 0x2df   :  { %557 = vst.msk [vmem:[#allocation2 + $0x8] sm:$0xff] %vm176_vm5, %v552_v51 }
 0x2e0   :  { %556 = vst.msk [vmem:[#allocation2] sm:$0xff] %vm176_vm5, %v551_v53 }
 0x2e4   :  { %v906_v56 = vpop.f32.mrb[10].mxu1 }
 0x2e5   :  { %v554_v58 = vadd.f32 %v906_v56, %v416_v54  ;;  %v542_v59 = vpop.f32.mrb[11].mxu1 }
 0x2e6   :  { %v553_v61 = vadd.f32 %v542_v59, %v415_v55  ;;  %v564_v62 = vld [vmem:[#allocation2 + $0x8] sm:$0xff] }
 0x2e7   :  { %559 = vst.msk [vmem:[#allocation2 + $0x18] sm:$0xff] %vm176_vm5, %v554_v58  ;;  %v563_v63 = vld [vmem:[#allocation2] sm:$0xff]  ;;  %v572_v2 = vmul.f32 %v568_v57, %v564_v62 }
 0x2e8   :  { %558 = vst.msk [vmem:[#allocation2 + $0x10] sm:$0xff] %vm176_vm5, %v553_v61  ;;  %v571_v3 = vmul.f32 %v567_v60, %v563_v63 }
 0x2ea   :  { %v955_v4 = vpack.c.bf16 %v572_v2, %v571_v3 }
 0x2ec   :  { %956 = vmatpush3.bf16.msra.mxu0 %v955_v4  ;;  %962 = vmatpush3.bf16.msra.mxu1 %v955_v4 }
 0x2ed   :  { %957 = vmatprep.subr.bf16.mxu0 %v1253_v0  ;;  %963 = vmatprep.subr.bf16.mxu1 %v1253_v0  ;;  %v577_v0 = vld [vmem:[#allocation14 + $0x10] sm:$0xff] }
 0x2ee   :  { %v566_v7 = vld [vmem:[#allocation2 + $0x18] sm:$0xff] }
 0x2ef   :  { %v565_v8 = vld [vmem:[#allocation2 + $0x10] sm:$0xff]  ;;  %v574_v9 = vmul.f32 %v570_v5, %v566_v7 }
 0x2f0   :  { %v573_v10 = vmul.f32 %v569_v6, %v565_v8 }
 0x2f2   :  { %v958_v11 = vpack.c.bf16 %v574_v9, %v573_v10 }
 0x2f4   :  { %959 = vmatpush3.bf16.msra.mxu0 %v958_v11  ;;  %965 = vmatpush3.bf16.msra.mxu1 %v958_v11 }
 0x2f7   :  { %916 = vmatmul.mubr.msk.f32.vlgmr.msra.gmra.mrb[4].mxu0 %vm195_vm1, %v575_v12  ;;  %939 = vmatmul.mubr.msk.f32.vlgmr.msra.gmra.mrb[12].mxu1 %vm195_vm1, %v827_v13 }
 0x2f8   :  { %918 = vmatprep.mubr.msk.f32.mxu0 %vm1254_vm0, %v1255_v1 }
 0x2fb   :  { %919 = vmatmul.mubr.msk.f32.gmra.mrb[6].mxu0 %vm195_vm1, %v576_v14 }
 0x2fc   :  { %921 = vmatprep.mubr.msk.f32.mxu0 %vm1254_vm0, %v1255_v1 }
 0x2ff   :  { %922 = vmatmul.mubr.msk.f32.gmra.mrb[8].mxu0 %vm195_vm1, %v577_v0 }
 0x300   :  { %924 = vmatprep.mubr.msk.f32.mxu0 %vm1254_vm0, %v1255_v1 }
 0x303   :  { %925 = vmatmul.mubr.msk.f32.gmra.mrb[10].mxu0 %vm195_vm1, %v578_v15 }
 0x304   :  { %927 = vmatprep.mubr.msk.f32.mxu0 %vm1254_vm0, %v1255_v1 }
 0x307   :  { %928 = vmatmul.mubr.msk.f32.gmra.mrb[12].mxu0 %vm195_vm1, %v579_v16 }
 0x3ca   :  { %v661_v17 = vpop.f32.mrb[4].mxu0  ;;  %v764_v18 = vpop.f32.mrb[12].mxu1 }
 0x3cb   :  { %685 = vst.msk [vmem:[#allocation18] sm:$0xff] %vm176_vm5, %v661_v17  ;;  %v917_v19 = vpop.f32.mrb[5].mxu0  ;;  %v940_v20 = vpop.f32.mrb[13].mxu1 }
 0x3cc   :  { %769 = vst.msk [vmem:[#allocation19] sm:$0x1] %vm768_vm7, %v764_v18 }
 0x3cd   :  { %1195 = shalt.err (!%p1192_p6)
}
 0x3ce   :  { %s1196_s19 = scalar_lea.hbm %s1560_s10, 16 }
 0x3cf   :  { %p1197_p7 = scmp.ne.s32.totalorder %s1560_s10, %s1196_s19  ;;  %p1200_p8 = scmp.lt.u32.totalorder %s1196_s19, %s1560_s10 }
 0x3d1   :  { %p1202_p9 = pnand %p1200_p8, %p1197_p7 }
 0x3d3   :  { %1205 = shalt.err (!%p1202_p9)
}
 0x3d4   :  { %791 = dma.vmem_to_hbm [thread:$0]  %s789_s23, 16, %s1560_s10, [#allocation20]   ;;  %v666_v1 = vpop.f32.mrb[6].mxu0 }
 0x3d5   :  { %686 = vst.msk [vmem:[#allocation18 + $0x8] sm:$0xff] %vm176_vm5, %v666_v1  ;;  %v920_v21 = vpop.f32.mrb[7].mxu0  ;;  %s1257_s4 = smov [#allocation18]  }
 0x3d6   :  { %v671_v22 = vpop.f32.mrb[8].mxu0  ;;  %s775_s0 = sshll.u32 %s1257_s4, 4  ;;  %s776_s0 = int_to_ptr.vmem [resolvable:$true] %s775_s0 }
 0x3d7   :  { %687 = vst.msk [vmem:[#allocation18 + $0x10] sm:$0xff] %vm176_vm5, %v671_v22  ;;  %v923_v23 = vpop.f32.mrb[9].mxu0  ;;  %s1206_s10 = scalar_lea.vmem %s776_s0, 640  ;;  %p1211_p11 = scmp.lt.s32.totalorder %s776_s0, %s776_s0 }
 0x3d8   :  { %v676_v24 = vpop.f32.mrb[10].mxu0  ;;  %p1207_p10 = scmp.ne.s32.totalorder %s776_s0, %s1206_s10  ;;  %p1212_p12 = scmp.lt.s32.totalorder %s1206_s10, %s1206_s10 }
 0x3d9   :  { %688 = vst.msk [vmem:[#allocation18 + $0x18] sm:$0xff] %vm176_vm5, %v676_v24  ;;  %v926_v25 = vpop.f32.mrb[11].mxu0 }
 0x3da   :  { %v681_v26 = vpop.f32.mrb[12].mxu0  ;;  %p1213_p13 = por %p1212_p12, %p1211_p11 }
 0x3db   :  { %689 = vst.msk [vmem:[#allocation18 + $0x20] sm:$0xff] %vm176_vm5, %v681_v26  ;;  %v929_v27 = vpop.f32.mrb[13].mxu0 }
 0x3dc   :  { %p1214_p0 = pnand %p1213_p13, %p1207_p10 }
 0x3de   :  { %1217 = shalt.err (!%p1214_p0)
}
 0x3df   :  { %s1218_s30 = scalar_lea.hbm %s1559_s9, 640 }
 0x3e0   :  { %p1219_p1 = scmp.ne.s32.totalorder %s1559_s9, %s1218_s30  ;;  %p1222_p2 = scmp.lt.u32.totalorder %s1218_s30, %s1559_s9 }
 0x3e2   :  { %p1224_p3 = pnand %p1222_p2, %p1219_p1 }
 0x3e4   :  { %1227 = shalt.err (!%p1224_p3)
}
 0x3e5   :  { %781 = dma.vmem_to_hbm [thread:$0]  %s776_s0, 640, %s1559_s9, [#allocation5], %s1244_s25, %s1244_s25, %s1245_s26  }
 0x3e6   :  { %1238 = dma.done.wait [#allocation5], 640  }
 0x3e7   :  { %1239 = vsyncadd [#allocation5], 4294966656 }
 0x3e8   :  { %1240 = dma.done.wait [#allocation20], 16  }
 0x3e9   :  { %1241 = vsyncadd [#allocation20], 4294967280 }
 0x3ea   :  { %798 = vsyncpa [#allocation4], 1 }
 0x3eb   :  { %799 = vsyncpa [#allocation7], 1 }
 0x3ec   :  { %800 = vsyncpa [#allocation10], 1 }
 0x3ed   :  { %801 = vsyncpa [#allocation13], 1 }
 0x3ee   :  { %802 = vsyncpa [#allocation16], 1 }
 0x3ef   :  { %803 = vsyncpa [#allocation5], 1 }
 0x3f0   :  { %804 = vsyncpa [#allocation20], 1 }

</bundles_post_ra>
